<compile_context>
chip_gen: v7x
topology: tpu7x:2x2x1
jax: 0.10.0
libtpu: 0.0.40
codegen_flags: <defaults>
</compile_context>

<pallas_src>
import jax
import jax.numpy as jnp
from jax.experimental import pallas as pl
from jax.experimental.pallas import tpu as pltpu


# ----------------------------- tiling helpers ------------------------------

_TILE_BYTES = 2 * 1024 * 1024  # per-buffer VMEM target (BlockSpec double-buffers)


def _round_up(x, m):
    return (x + m - 1) // m * m


def _choose_q_tile(q, c):
    # Biggest query tile (multiple of 8) whose VMEM block stays under the target,
    # accounting for lane padding of the class axis to 128.
    lane_c = max(_round_up(c, 128), 128)
    rows_cap = max(8, (_TILE_BYTES // (lane_c * 4)) // 8 * 8)
    return min(_round_up(q, 8), rows_cap)


# ------------------- fused focal(neg) + cardinality kernel ------------------
# One HBM pass over (L, B, Q, C) logits.  Per grid step it reduces the block to two
# scalars (focal "all-negatives" partial, cardinality count) and RMWs them into one
# (8,128) vreg per (level, batch).  Labels are NOT needed here: the positive
# correction is applied outside on the matched logits only.

def _make_fused_kernel(alpha: float, gamma: float, q_real: int):
    def kernel(logits_ref, focal_ref, card_ref):
        t_id = pl.program_id(2)
        x = logits_ref[0, 0].astype(jnp.float32)            # (tile, C), cast in-kernel
        tile, c = x.shape

        row = jax.lax.broadcasted_iota(jnp.int32, (tile, 1), 0)
        valid = (t_id * tile + row) < q_real                 # mask tail-tile rows
        x = jnp.where(valid, x, 0.0)                         # sanitize OOB garbage first
        validf = valid.astype(jnp.float32)

        # focal loss with target t == 0 everywhere:
        #   focal(x, 0) = (1 - alpha) * softplus(x) * sigmoid(x)^gamma
        e = jnp.exp(-jnp.abs(x))                             # EUP
        denom = 1.0 + e
        prob = jnp.where(x >= 0.0, 1.0, e) / denom           # == sigmoid(x)
        sp = jnp.maximum(x, 0.0) + jnp.log(denom)            # == softplus(x)
        mod = prob * prob if gamma == 2.0 else jnp.power(prob, gamma)
        loss0 = (1.0 - alpha) * sp * mod * validf
        focal_partial = jnp.sum(loss0)                       # XLU full reduce -> scalar

        # cardinality: first-occurrence argmax != C-1  <=>  max(x[:, :C-1]) >= x[:, C-1]
        cls = jax.lax.broadcasted_iota(jnp.int32, (tile, c), 1)
        head_max = jnp.max(jnp.where(cls < c - 1, x, -jnp.inf), axis=-1, keepdims=True)
        last = jnp.sum(jnp.where(cls == c - 1, x, 0.0), axis=-1, keepdims=True)
        not_empty = jnp.where(head_max >= last, 1.0, 0.0) * validf
        card_partial = jnp.sum(not_empty)

        @pl.when(t_id == 0)
        def _():
            focal_ref[...] = jnp.zeros_like(focal_ref)
            card_ref[...] = jnp.zeros_like(card_ref)

        # scalar RMW into one lane-dense (8,128) vreg per (level, batch)
        focal_ref[...] += focal_partial
        card_ref[...] += card_partial

    return kernel


def fused_focal_cardinality(logits, *, alpha=0.25, gamma=2.0):
    """logits: (L, B, Q, C) float (native dtype; cast happens in-kernel).
    Returns (focal_neg_sum[L], card_counts[L, B])."""
    L, B, Q, C = logits.shape
    tile = _choose_q_tile(Q, C)
    n_tiles = pl.cdiv(Q, tile)

    kernel = _make_fused_kernel(float(alpha), float(gamma), int(Q))
    focal, card = pl.pallas_call(
        kernel,
        out_shape=(jax.ShapeDtypeStruct((L, B, 8, 128), jnp.float32),
                   jax.ShapeDtypeStruct((L, B, 8, 128), jnp.float32)),
        grid=(L, B, n_tiles),
        in_specs=[pl.BlockSpec((1, 1, tile, C), lambda l, b, t: (l, b, t, 0))],
        out_specs=(pl.BlockSpec((1, 1, 8, 128), lambda l, b, t: (l, b, 0, 0)),
                   pl.BlockSpec((1, 1, 8, 128), lambda l, b, t: (l, b, 0, 0))),
        compiler_params=pltpu.CompilerParams(
            dimension_semantics=("parallel", "parallel", "arbitrary"),
            vmem_limit_bytes=32 * 1024 * 1024),
    )(logits)

    focal_neg_sum = jnp.sum(focal[:, :, 0, 0], axis=1)   # (L,)
    card_counts = card[:, :, 0, 0]                        # (L, B)
    return focal_neg_sum, card_counts


def _focal_pos_minus_neg(x, alpha, gamma):
    # Exact (focal(x, t=1) - focal(x, t=0)) on the tiny matched-logit array (XLA).
    prob = jax.nn.sigmoid(x)
    pos = alpha * jax.nn.softplus(-x) * jnp.power(1.0 - prob, gamma)
    neg = (1.0 - alpha) * jax.nn.softplus(x) * jnp.power(prob, gamma)
    return pos - neg


# --------------------------- box losses kernel ------------------------------
# Single grid step (data is tiny).  Layout: coords on sublanes (src cx,cy,w,h then
# tgt cx,cy,w,h), box pairs on lanes (N padded to 128).  Output row 0 = GIoU, row 1 = L1.

def _box_kernel(box_ref, out_ref):
    d = box_ref[...].astype(jnp.float32)                 # (L, 8, N_pad)
    scx, scy, sw, sh = d[:, 0:1, :], d[:, 1:2, :], d[:, 2:3, :], d[:, 3:4, :]
    tcx, tcy, tw, th = d[:, 4:5, :], d[:, 5:6, :], d[:, 6:7, :], d[:, 7:8, :]

    l1 = (jnp.abs(scx - tcx) + jnp.abs(scy - tcy)
          + jnp.abs(sw - tw) + jnp.abs(sh - th))         # (L, 1, N_pad)

    sx1, sy1 = scx - 0.5 * sw, scy - 0.5 * sh
    sx2, sy2 = scx + 0.5 * sw, scy + 0.5 * sh
    tx1, ty1 = tcx - 0.5 * tw, tcy - 0.5 * th
    tx2, ty2 = tcx + 0.5 * tw, tcy + 0.5 * th

    area_s = (sx2 - sx1) * (sy2 - sy1)
    area_t = (tx2 - tx1) * (ty2 - ty1)
    iw = jnp.maximum(jnp.minimum(sx2, tx2) - jnp.maximum(sx1, tx1), 0.0)
    ih = jnp.maximum(jnp.minimum(sy2, ty2) - jnp.maximum(sy1, ty1), 0.0)
    inter = iw * ih
    union = area_s + area_t - inter
    ew = jnp.maximum(sx2, tx2) - jnp.minimum(sx1, tx1)
    eh = jnp.maximum(sy2, ty2) - jnp.minimum(sy1, ty1)
    earea = ew * eh

    eps = 1e-7  # TODO(synk): eps-guarded divisions differ from torchvision's exact divide for degenerate boxes.
    iou = inter / (union + eps)
    giou = iou - (earea - union) / (earea + eps)         # (L, 1, N_pad)

    out_ref[:, 0:1, :] = giou
    out_ref[:, 1:2, :] = l1


def box_losses_pallas(src_boxes, target_boxes):
    """src/target: (L, N, 4) cxcywh. Returns (l1_sum[L], giou[L, N])."""
    L, N, _ = src_boxes.shape
    n_pad = max(_round_up(N, 128), 128)
    packed = jnp.concatenate(
        [jnp.transpose(src_boxes, (0, 2, 1)),
         jnp.transpose(target_boxes, (0, 2, 1))], axis=1)          # (L, 8, N)
    packed = jnp.pad(packed, ((0, 0), (0, 0), (0, n_pad - N)))     # (L, 8, N_pad)

    out = pl.pallas_call(
        _box_kernel,
        out_shape=jax.ShapeDtypeStruct((L, 2, n_pad), jnp.float32),
    )(packed)

    giou = out[:, 0, :N]
    l1_sum = jnp.sum(out[:, 1, :N], axis=-1)
    return l1_sum, giou


# ----------------------------- JAX criterion --------------------------------

def identity_matcher(outputs, targets):
    # Stand-in for the injected Hungarian matcher (external dependency):
    # deterministically matches target j of batch b to query j of batch b.
    return [(jnp.arange(t['labels'].shape[0], dtype=jnp.int32),
             jnp.arange(t['labels'].shape[0], dtype=jnp.int32)) for t in targets]


class SetCriterionEarlyExit:
    def __init__(self, num_classes, matcher, weight_dict, losses, focal_alpha=0.25):
        self.num_classes = num_classes
        self.matcher = matcher
        self.weight_dict = weight_dict
        self.losses = losses
        self.focal_alpha = focal_alpha
        self.check_cls = False   # kept as device scalars after forward (no host sync)
        self.check_box = False

    def _get_src_permutation_idx(self, indices):
        batch_idx = jnp.concatenate(
            [jnp.full_like(src, i) for i, (src, _) in enumerate(indices)])
        src_idx = jnp.concatenate([src for src, _ in indices])
        return batch_idx, src_idx

    # ---- forward ----
    def forward(self, outputs, targets):
        outputs_without_aux = {k: v for k, v in outputs.items() if k != 'aux_outputs'}
        indices = self.matcher(outputs_without_aux, targets)
        num_boxes = float(max(sum(int(t['labels'].shape[0]) for t in targets), 1))
        # TODO(synk): distributed all_reduce / world-size division of num_boxes omitted (single host).

        B, Q, C = outputs['logits'].shape
        tgt_lengths = jnp.array([t['labels'].shape[0] for t in targets], dtype=jnp.float32)

        # Levels: 0 = main head, 1..K = aux heads (each matched independently).
        levels = [(outputs['logits'], outputs['pred_boxes'], indices)]
        for aux in outputs.get('aux_outputs', []):
            levels.append((aux['logits'], aux['pred_boxes'], self.matcher(aux, targets)))
        L = len(levels)

        need_cls = ('labels' in self.losses) or ('cardinality' in self.losses)
        need_box = 'boxes' in self.losses

        matched_logits_list, tco_list, src_box_list, tgt_box_list = [], [], [], []
        for lgt, pbox, idx in levels:
            bidx, sidx = self._get_src_permutation_idx(idx)
            tco_list.append(jnp.concatenate([t['labels'][J] for t, (_, J) in zip(targets, idx)]))
            matched_logits_list.append(lgt[bidx, sidx])
            src_box_list.append(pbox[bidx, sidx])
            tgt_box_list.append(jnp.concatenate(
                [t['boxes'][i] for t, (_, i) in zip(targets, idx)], axis=0))

        losses = {}
        check_cls = jnp.asarray(self.check_cls, dtype=bool)
        check_box = jnp.asarray(self.check_box, dtype=bool)

        if need_cls:
            # Single fused HBM pass over all heads.  (If the model already emits the
            # decoder levels as one contiguous (L,B,Q,C) array, pass it directly to
            # fused_focal_cardinality and skip this stack -- the only remaining copy.)
            logits_stack = jnp.stack([lv[0] for lv in levels], axis=0)   # (L,B,Q,C), native dtype
            focal_neg_sum, card_counts = fused_focal_cardinality(
                logits_stack, alpha=self.focal_alpha, gamma=2.0)

        if 'labels' in self.losses:
            matched_stack = jnp.stack(matched_logits_list, axis=0).astype(jnp.float32)  # (L,N,C)
            tco_stack = jnp.stack(tco_list, axis=0).astype(jnp.int32)                   # (L,N)
            pred = jnp.argmax(matched_stack, axis=-1)                                   # (L,N)
            maxv = jnp.max(matched_stack, axis=-1)                                      # (L,N)
            # exact positive correction on the ~num_boxes matched logits (tiny, plain XLA)
            x_pos = jnp.take_along_axis(matched_stack, tco_stack[..., None], axis=-1)[..., 0]
            pos_corr = jnp.sum(_focal_pos_minus_neg(x_pos, self.focal_alpha, 2.0), axis=-1)
            focal_total = focal_neg_sum + pos_corr                                       # (L,)
            # reference: sigmoid_focal_loss(...).mean(1).sum()/num_boxes == sum/(Q*num_boxes)
            loss_ce_all = focal_total / (jnp.float32(Q) * jnp.float32(num_boxes))
            ok_all = jnp.all(jnp.logical_and(pred == tco_stack,
                                             jax.nn.sigmoid(maxv) >= 0.1), axis=-1)      # (L,)
            check_cls = ok_all[L - 1]   # last processed level wins (reference behavior)

        if 'cardinality' in self.losses:
            card_err_all = jnp.mean(jnp.abs(card_counts - tgt_lengths[None, :]), axis=-1)  # (L,)

        if need_box:
            src_stack = jnp.stack(src_box_list, axis=0)                  # (L,N,4)
            tgt_stack = jnp.stack(tgt_box_list, axis=0)
            l1_sums, gious = box_losses_pallas(src_stack, tgt_stack)     # (L,), (L,N)
            loss_bbox_all = l1_sums / jnp.float32(num_boxes)
            loss_giou_all = jnp.sum(1.0 - gious, axis=-1) / jnp.float32(num_boxes)
            check_box = jnp.mean(gious[L - 1]) >= 0.6    # last level wins (reference behavior)

        for lvl in range(L):
            sfx = '' if lvl == 0 else f'_{lvl - 1}'
            if 'labels' in self.losses:
                losses['loss_ce' + sfx] = loss_ce_all[lvl]
                if lvl == 0:   # log=True only for the main head
                    acc = jnp.mean((pred[0] == tco_stack[0]).astype(jnp.float32)) * 100.0
                    losses['class_error'] = 100.0 - acc
            if 'cardinality' in self.losses:
                losses['cardinality_error' + sfx] = card_err_all[lvl]
            if 'boxes' in self.losses:
                losses['loss_bbox' + sfx] = loss_bbox_all[lvl]
                losses['loss_giou' + sfx] = loss_giou_all[lvl]

        self.check_cls = check_cls
        self.check_box = check_box
        early_exit = jnp.logical_and(check_box, check_cls)   # device scalar, no bool() sync

        # matched predictions for the main head (vectorized device arrays, no host loop)
        src_boxes = src_box_list[0]
        if 'labels' in self.losses:
            label_pred = (pred[0], maxv[0])
        else:
            ml0 = matched_logits_list[0]
            label_pred = (jnp.argmax(ml0, axis=-1), jnp.max(ml0, axis=-1))

        return losses, early_exit, src_boxes, label_pred


# ----------------------------------- main -----------------------------------

if __name__ == "__main__":
    key = jax.random.PRNGKey(0)
    B, Q, num_classes = 2, 8, 32
    ks = jax.random.split(key, 8)

    logits = jax.random.normal(ks[0], (B, Q, num_classes), dtype=jnp.float32)
    pred_boxes = jax.nn.sigmoid(jax.random.normal(ks[1], (B, Q, 4), dtype=jnp.float32))
    aux_logits = jax.random.normal(ks[2], (B, Q, num_classes), dtype=jnp.float32)
    aux_boxes = jax.nn.sigmoid(jax.random.normal(ks[3], (B, Q, 4), dtype=jnp.float32))
    outputs = {
        'logits': logits,
        'pred_boxes': pred_boxes,
        'aux_outputs': [{'logits': aux_logits, 'pred_boxes': aux_boxes}],
    }

    n_targets = [3, 2]
    targets = []
    for b in range(B):
        labels = jax.random.randint(ks[4 + b], (n_targets[b],), 0, num_classes,
                                    dtype=jnp.int32)
        boxes = jax.nn.sigmoid(
            jax.random.normal(ks[6 + b], (n_targets[b], 4), dtype=jnp.float32)
        ) * 0.5 + 0.25  # valid (cx, cy, w, h) in (0.25, 0.75)
        targets.append({'labels': labels, 'boxes': boxes})

    weight_dict = {'loss_ce': 1.0, 'loss_bbox': 5.0, 'loss_giou': 2.0}
    criterion = SetCriterionEarlyExit(num_classes, identity_matcher, weight_dict,
                                      losses=['labels', 'boxes', 'cardinality'],
                                      focal_alpha=0.25)

    losses, early_exit, src_boxes, label_pred = criterion.forward(outputs, targets)

    jax.block_until_ready(src_boxes)
    jax.block_until_ready(early_exit)
    for v in losses.values():
        jax.block_until_ready(v)
    for a in label_pred:
        jax.block_until_ready(a)

    print("KERNEL_OK")
</pallas_src>

<mosaic_0001>
module attributes {stable_mosaic.version = 11 : i64} {
  func.func @kernel(%arg0: i32, %arg1: i32, %arg2: i32, %arg3: memref<1x1x8x32xf32, #tpu.memory_space<vmem>>, %arg4: memref<1x1x8x128xf32, #tpu.memory_space<vmem>>, %arg5: memref<1x1x8x128xf32, #tpu.memory_space<vmem>>) attributes {dimension_semantics = [#tpu.dimension_semantics<parallel>, #tpu.dimension_semantics<parallel>, #tpu.dimension_semantics<arbitrary>], iteration_bounds = array<i64: 2, 2, 1>, scalar_prefetch = 0 : i64, scratch_operands = 0 : i64, tpu.core_type = #tpu.core_type<tc>, window_params = [{transform_indices = @transform_0, window_bounds = array<i64: 1, 1, 8, 32>}, {transform_indices = @transform_1, window_bounds = array<i64: 1, 1, 8, 128>}, {transform_indices = @transform_2, window_bounds = array<i64: 1, 1, 8, 128>}]} {
    %c0 = arith.constant 0 : index
    %c0_0 = arith.constant 0 : index
    %c0_1 = arith.constant 0 : index
    %c0_2 = arith.constant 0 : index
    %0 = vector.load %arg3[%c0, %c0_0, %c0_1, %c0_2] : memref<1x1x8x32xf32, #tpu.memory_space<vmem>>, vector<1x1x8x32xf32>
    %1 = vector.shape_cast %0 : vector<1x1x8x32xf32> to vector<8x32xf32>
    %2 = tpu.iota {dimensions = array<i32: 0>} : vector<8x1xi32>
    %c8_i32 = arith.constant 8 : i32
    %3 = arith.muli %arg2, %c8_i32 : i32
    %4 = vector.broadcast %3 : i32 to vector<8x1xi32>
    %5 = arith.addi %4, %2 : vector<8x1xi32>
    %c8_i32_3 = arith.constant 8 : i32
    %6 = vector.broadcast %c8_i32_3 : i32 to vector<8x1xi32>
    %7 = arith.cmpi slt, %5, %6 : vector<8x1xi32>
    %cst = arith.constant 0.000000e+00 : f32
    %8 = vector.shape_cast %7 : vector<8x1xi1> to vector<8x1xi1>
    %9 = vector.broadcast %8 : vector<8x1xi1> to vector<8x32xi1>
    %10 = vector.broadcast %cst : f32 to vector<8x32xf32>
    %11 = arith.select %9, %1, %10 : vector<8x32xi1>, vector<8x32xf32>
    %12 = arith.extui %7 : vector<8x1xi1> to vector<8x1xi32>
    %13 = arith.sitofp %12 : vector<8x1xi32> to vector<8x1xf32>
    %14 = math.absf %11 : vector<8x32xf32>
    %cst_4 = arith.constant 0.000000e+00 : f32
    %15 = vector.broadcast %cst_4 : f32 to vector<8x32xf32>
    %16 = arith.subf %15, %14 : vector<8x32xf32>
    %17 = math.exp %16 : vector<8x32xf32>
    %cst_5 = arith.constant 1.000000e+00 : f32
    %18 = vector.broadcast %cst_5 : f32 to vector<8x32xf32>
    %19 = arith.addf %18, %17 : vector<8x32xf32>
    %cst_6 = arith.constant 0.000000e+00 : f32
    %20 = vector.broadcast %cst_6 : f32 to vector<8x32xf32>
    %21 = arith.cmpf oge, %11, %20 : vector<8x32xf32>
    %cst_7 = arith.constant 1.000000e+00 : f32
    %22 = vector.broadcast %cst_7 : f32 to vector<8x32xf32>
    %23 = arith.select %21, %22, %17 : vector<8x32xi1>, vector<8x32xf32>
    %24 = arith.divf %23, %19 : vector<8x32xf32>
    %cst_8 = arith.constant 0.000000e+00 : f32
    %25 = vector.broadcast %cst_8 : f32 to vector<8x32xf32>
    %26 = arith.maximumf %11, %25 : vector<8x32xf32>
    %27 = math.log %19 : vector<8x32xf32>
    %28 = arith.addf %26, %27 : vector<8x32xf32>
    %29 = arith.mulf %24, %24 : vector<8x32xf32>
    %cst_9 = arith.constant 7.500000e-01 : f32
    %30 = vector.broadcast %cst_9 : f32 to vector<8x32xf32>
    %31 = arith.mulf %30, %28 : vector<8x32xf32>
    %32 = arith.mulf %31, %29 : vector<8x32xf32>
    %33 = vector.broadcast %13 : vector<8x1xf32> to vector<8x32xf32>
    %34 = arith.mulf %32, %33 : vector<8x32xf32>
    %35 = vector.shape_cast %34 : vector<8x32xf32> to vector<1x8x32xf32>
    %cst_10 = arith.constant dense<0.000000e+00> : vector<1xf32>
    %36 = vector.multi_reduction <add>, %35, %cst_10 [1, 2] : vector<1x8x32xf32> to vector<1xf32>
    %37 = vector.shape_cast %36 : vector<1xf32> to vector<1x1x1xf32>
    %38 = vector.extract %37[0, 0, 0] : f32 from vector<1x1x1xf32>
    %39 = tpu.iota {dimensions = array<i32: 1>} : vector<8x32xi32>
    %c31_i32 = arith.constant 31 : i32
    %40 = vector.broadcast %c31_i32 : i32 to vector<8x32xi32>
    %41 = arith.cmpi slt, %39, %40 : vector<8x32xi32>
    %cst_11 = arith.constant 0xFF800000 : f32
    %42 = vector.broadcast %cst_11 : f32 to vector<8x32xf32>
    %43 = arith.select %41, %11, %42 : vector<8x32xi1>, vector<8x32xf32>
    %cst_12 = arith.constant dense<0xFF800000> : vector<8xf32>
    %44 = vector.multi_reduction <maximumf>, %43, %cst_12 [1] : vector<8x32xf32> to vector<8xf32>
    %45 = vector.shape_cast %44 : vector<8xf32> to vector<8x1xf32>
    %c31_i32_13 = arith.constant 31 : i32
    %46 = vector.broadcast %c31_i32_13 : i32 to vector<8x32xi32>
    %47 = arith.cmpi eq, %39, %46 : vector<8x32xi32>
    %cst_14 = arith.constant 0.000000e+00 : f32
    %48 = vector.broadcast %cst_14 : f32 to vector<8x32xf32>
    %49 = arith.select %47, %11, %48 : vector<8x32xi1>, vector<8x32xf32>
    %cst_15 = arith.constant dense<0.000000e+00> : vector<8xf32>
    %50 = vector.multi_reduction <add>, %49, %cst_15 [1] : vector<8x32xf32> to vector<8xf32>
    %51 = vector.shape_cast %50 : vector<8xf32> to vector<8x1xf32>
    %52 = arith.cmpf oge, %45, %51 : vector<8x1xf32>
    %cst_16 = arith.constant 1.000000e+00 : f32
    %cst_17 = arith.constant 0.000000e+00 : f32
    %53 = vector.broadcast %cst_16 : f32 to vector<8x1xf32>
    %54 = vector.broadcast %cst_17 : f32 to vector<8x1xf32>
    %55 = arith.select %52, %53, %54 : vector<8x1xi1>, vector<8x1xf32>
    %56 = arith.mulf %55, %13 : vector<8x1xf32>
    %57 = vector.shape_cast %56 : vector<8x1xf32> to vector<1x8x1xf32>
    %cst_18 = arith.constant dense<0.000000e+00> : vector<1xf32>
    %58 = vector.multi_reduction <add>, %57, %cst_18 [1, 2] : vector<1x8x1xf32> to vector<1xf32>
    %59 = vector.shape_cast %58 : vector<1xf32> to vector<1x1x1xf32>
    %60 = vector.extract %59[0, 0, 0] : f32 from vector<1x1x1xf32>
    %c0_i32 = arith.constant 0 : i32
    %61 = arith.cmpi eq, %arg2, %c0_i32 : i32
    %62 = arith.extui %61 : i1 to i32
    %c0_i32_19 = arith.constant 0 : i32
    %63 = arith.cmpi ne, %62, %c0_i32_19 : i32
    scf.if %63 {
      %cst_36 = arith.constant 0.000000e+00 : f32
      %72 = vector.broadcast %cst_36 : f32 to vector<1x1x8x128xf32>
      %c0_37 = arith.constant 0 : index
      %c0_38 = arith.constant 0 : index
      %c0_39 = arith.constant 0 : index
      %c0_40 = arith.constant 0 : index
      %73 = vector.load %arg4[%c0_37, %c0_38, %c0_39, %c0_40] : memref<1x1x8x128xf32, #tpu.memory_space<vmem>>, vector<1x1x8x128xf32>
      tpu.vector_store %arg4[%c0_37, %c0_38, %c0_39, %c0_40], %72 {strides = array<i32>} : memref<1x1x8x128xf32, #tpu.memory_space<vmem>>, vector<1x1x8x128xf32>,
      %cst_41 = arith.constant 0.000000e+00 : f32
      %74 = vector.broadcast %cst_41 : f32 to vector<1x1x8x128xf32>
      %c0_42 = arith.constant 0 : index
      %c0_43 = arith.constant 0 : index
      %c0_44 = arith.constant 0 : index
      %c0_45 = arith.constant 0 : index
      %75 = vector.load %arg5[%c0_42, %c0_43, %c0_44, %c0_45] : memref<1x1x8x128xf32, #tpu.memory_space<vmem>>, vector<1x1x8x128xf32>
      tpu.vector_store %arg5[%c0_42, %c0_43, %c0_44, %c0_45], %74 {strides = array<i32>} : memref<1x1x8x128xf32, #tpu.memory_space<vmem>>, vector<1x1x8x128xf32>,
    } else {
    }
    %c0_20 = arith.constant 0 : index
    %c0_21 = arith.constant 0 : index
    %c0_22 = arith.constant 0 : index
    %c0_23 = arith.constant 0 : index
    %64 = vector.load %arg4[%c0_20, %c0_21, %c0_22, %c0_23] : memref<1x1x8x128xf32, #tpu.memory_space<vmem>>, vector<1x1x8x128xf32>
    %65 = vector.broadcast %38 : f32 to vector<1x1x8x128xf32>
    %66 = arith.addf %64, %65 : vector<1x1x8x128xf32>
    %c0_24 = arith.constant 0 : index
    %c0_25 = arith.constant 0 : index
    %c0_26 = arith.constant 0 : index
    %c0_27 = arith.constant 0 : index
    %67 = vector.load %arg4[%c0_24, %c0_25, %c0_26, %c0_27] : memref<1x1x8x128xf32, #tpu.memory_space<vmem>>, vector<1x1x8x128xf32>
    tpu.vector_store %arg4[%c0_24, %c0_25, %c0_26, %c0_27], %66 {strides = array<i32>} : memref<1x1x8x128xf32, #tpu.memory_space<vmem>>, vector<1x1x8x128xf32>,
    %c0_28 = arith.constant 0 : index
    %c0_29 = arith.constant 0 : index
    %c0_30 = arith.constant 0 : index
    %c0_31 = arith.constant 0 : index
    %68 = vector.load %arg5[%c0_28, %c0_29, %c0_30, %c0_31] : memref<1x1x8x128xf32, #tpu.memory_space<vmem>>, vector<1x1x8x128xf32>
    %69 = vector.broadcast %60 : f32 to vector<1x1x8x128xf32>
    %70 = arith.addf %68, %69 : vector<1x1x8x128xf32>
    %c0_32 = arith.constant 0 : index
    %c0_33 = arith.constant 0 : index
    %c0_34 = arith.constant 0 : index
    %c0_35 = arith.constant 0 : index
    %71 = vector.load %arg5[%c0_32, %c0_33, %c0_34, %c0_35] : memref<1x1x8x128xf32, #tpu.memory_space<vmem>>, vector<1x1x8x128xf32>
    tpu.vector_store %arg5[%c0_32, %c0_33, %c0_34, %c0_35], %70 {strides = array<i32>} : memref<1x1x8x128xf32, #tpu.memory_space<vmem>>, vector<1x1x8x128xf32>,
    return
  }
  func.func @transform_0(%arg0: i32, %arg1: i32, %arg2: i32) -> (i32, i32, i32, i32) {
    %c0_i32 = arith.constant 0 : i32
    %c0_i32_0 = arith.constant 0 : i32
    return %arg0, %arg1, %arg2, %c0_i32 : i32, i32, i32, i32
  }
  func.func @transform_1(%arg0: i32, %arg1: i32, %arg2: i32) -> (i32, i32, i32, i32) {
    %c0_i32 = arith.constant 0 : i32
    %c0_i32_0 = arith.constant 0 : i32
    %c0_i32_1 = arith.constant 0 : i32
    return %arg0, %arg1, %c0_i32, %c0_i32_0 : i32, i32, i32, i32
  }
  func.func @transform_2(%arg0: i32, %arg1: i32, %arg2: i32) -> (i32, i32, i32, i32) {
    %c0_i32 = arith.constant 0 : i32
    %c0_i32_0 = arith.constant 0 : i32
    %c0_i32_1 = arith.constant 0 : i32
    return %arg0, %arg1, %c0_i32, %c0_i32_0 : i32, i32, i32, i32
  }
}

</mosaic_0001>

<bundles_post_ra>
// kernel: tpu_custom_call.1
= control target key start
LH: loop header
LB: loop body
LE: loop exit
PB: predicated region body
PF: predicated region fallthrough
CT: control target
= control target key end

     0   :  { %8 = vsyncpa [#allocation3], 0  ;;  %s970_s0 = inlined_call_operand.hbm [shape: f32[2,2,8,32], index: 0, kind: input, shape index: {}]   ;;  %s971_s1 = inlined_call_operand.hbm [shape: f32[2,2,8,128], index: 1, kind: output, shape index: {0}]   ;;  %s972_s2 = inlined_call_operand.hbm [shape: f32[2,2,8,128], index: 2, kind: output, shape index: {1}]  }
   0x1   :  { %10 = vsyncpa [#allocation3 + $0x1], 0 }
   0x2   :  { %11 = vsyncpa [#allocation4], 0 }
   0x3   :  { %13 = vsyncpa [#allocation4 + $0x1], 0 }
   0x4   :  { %14 = vsyncpa [#allocation7], 0 }
   0x5   :  { %16 = vsyncpa [#allocation7 + $0x1], 0  ;;  %s732_s9 = smov 0   ;;  %s734_s10 = smov 0  }
   0x6   :  { %s736_s11 = smov 0   ;;  %s738_s12 = smov 0  }
   0x7   :  { %s740_s13 = smov 0   ;;  %s742_s14 = smov 0  }
   0x8   :  { %s744_s15 = smov 0   ;;  %s746_s16 = smov 0  }
   0x9 LB: > { %s438_s17 = sadd.s32 4294967295, %s711_s16   ;;  %s439_s18 = sadd.s32 4294967294, %s711_s16   ;;  %s711_s16 = sphi %s746_s16, %s22_s16   ;;  %s707_s15 = sphi %s744_s15, %s989_s15   ;;  %s703_s14 = sphi %s742_s14, %s988_s14   ;;  %s699_s13 = sphi %s740_s13, %s987_s13   ;;  %s695_s12 = sphi %s738_s12, %s986_s12   ;;  %s691_s11 = sphi %s736_s11, %s985_s11   ;;  %s687_s10 = sphi %s734_s10, %s984_s10   ;;  %s683_s9 = sphi %s732_s9, %s983_s9  }
   0xa   : > { %s37_s19 = sadd.s32 1, %s703_s14  ;;  %s41_s20 = sadd.s32 1, %s707_s15 }
   0xb   : > { %p39_p0 = scmp.ge.s32.totalorder %s37_s19, 2  ;;  %s52_s21 = sadd.s32 1, %s691_s11 }
   0xc   : > { %p59_p1 = scmp.ne.s32.totalorder %s691_s11, %s687_s10  ;;  %p60_p2 = scmp.eq.s32.totalorder %s711_s16, 0 }
   0xd   : > { %s991_s19 = smov (%p39_p0, %s37_s19), 0  ;;  %s993_s20 = smov (!%p39_p0, %s41_s20), %s707_s15 }
   0xe   : > { %s46_s22 = ssub.s32 %s703_s14, %s991_s19  ;;  %p785_p3 = por %p60_p2, %p59_p1 }
   0xf   : > { %p43_p4 = scmp.ge.s32.totalorder %s993_s20, 2  ;;  %p65_p5 = scmp.ne.s32.totalorder %s687_s10, %s683_s9 }
  0x10   : > { %p66_p6 = scmp.eq.s32.totalorder %s438_s17, 0  ;;  %p91_p7 = scmp.eq.s32.totalorder %s438_s17, 3 }
  0x11   : > { %s995_s20 = smov (%p43_p4, %s993_s20), 0  ;;  %p97_p10 = scmp.eq.s32.totalorder %s439_s18, 3 }
  0x12   : > { %p793_p8 = por %p66_p6, %p65_p5  ;;  %p797_p9 = por %p91_p7, %p59_p1 }
  0x13   : > { %s45_s26 = ssub.s32 %s707_s15, %s995_s20  ;;  %p803_p12 = por %p97_p10, %p65_p5 }
  0x14   : > { %s976_s25 = scalar_select %p797_p9, 1, 0 }
  0x15   : > { %s47_s27 = sor.u32 %s46_s22, %s45_s26  ;;  %p478_p13 = scmp.lt.s32.totalorder %s711_s16, 4 }
  0x16   : > { %p50_p11 = scmp.eq.s32.totalorder %s47_s27, 0  ;;  %s145_s29 = sand.u32 1, %s691_s11  }
  0x17   : > { %s977_s28 = scalar_select %p803_p12, 1, 0 }
  0x18   : > { %s810_s30 = scalar_select %p50_p11, %s691_s11, %s52_s21  }
  0x19   : > { %s442_s3 = sshll.u32 %s145_s29, 3  ;;  %s443_s4 = sshll.u32 %s707_s15, 1 }
  0x1a   : > { %s155_s5 = sadd.s32 %s703_s14, %s443_s4  ;;  %s149_s6 = scalar_lea.vmem [#allocation2], %s442_s3 }
  0x1b   : > { %s159_s7 = sshll.u32 %s149_s6, 4  ;;  %s444_s8 = sshll.u32 %s155_s5, 7  ;;  %s814_s7 = int_to_ptr.vmem [resolvable:$true] %s159_s7 }
  0x1c   : > { %s819_s22 = scalar_lea.hbm %s970_s0, %s444_s8  ;;  %p823_p0 = pnand %p478_p13, %p785_p3 }
  0x1d   : > { %s146_s26 = scalar_lea.sflag [#allocation3], %s145_s29  ;;  %s551_s27 = scalar_lea.hbm %s819_s22, 128 }
  0x1e   : > { %p552_p4 = scmp.ne.s32.totalorder %s819_s22, %s551_s27  ;;  %p553_p5 = pneg %p823_p0 }
  0x1f   : > { %s556_s4 = scalar_lea.hbm %s970_s0, 512  ;;  %p557_p3 = scmp.lt.u32.totalorder %s819_s22, %s970_s0 }
  0x20   : > { %p554_p6 = pnand %p553_p5, %p552_p4  ;;  %p558_p10 = scmp.lt.u32.totalorder %s556_s4, %s551_s27 }
  0x21   : > { %p560_p13 = scmp.lt.u32.totalorder %s551_s27, %s819_s22 }
  0x22   : > { %p555_p7 = pneg %p554_p6  ;;  %p559_p11 = por %p558_p10, %p557_p3 }
  0x24   : > { %p561_p1 = por %p560_p13, %p559_p11 }
  0x26   : > { %p562_p2 = pnand %p561_p1, %p555_p7 }
  0x28   : > { %565 = shalt.err (!%p562_p2)
}
  0x29   : > { %s566_s29 = scalar_lea.vmem %s814_s7, 128  ;;  %s713_s8 = smov [#allocation2]  }
  0x2a   : > { %p567_p4 = scmp.ne.s32.totalorder %s814_s7, %s566_s29  ;;  %s571_s17 = sshll.u32 %s713_s8, 4  ;;  %s572_s17 = int_to_ptr.vmem [resolvable:$false] %s571_s17 }
  0x2b   : > { %s573_s18 = scalar_lea.vmem %s572_s17, 256  ;;  %p574_p9 = scmp.lt.s32.totalorder %s814_s7, %s572_s17 }
  0x2c   : > { %p569_p6 = pnand %p567_p4, %p553_p5  ;;  %p575_p3 = scmp.lt.s32.totalorder %s573_s18, %s566_s29 }
  0x2e   : > { %p570_p12 = pneg %p569_p6  ;;  %p576_p10 = por %p575_p3, %p574_p9 }
  0x30   : > { %p577_p11 = pnand %p576_p10, %p570_p12 }
  0x32   : > { %580 = shalt.err (!%p577_p11)
}
  0x33   : > { %470 = dma.hbm_to_vmem [thread:$0]  (!%p823_p0), %s819_s22, 128, %s814_s7, %s146_s26  }
  0x34   : > { %p979_p1 = scmp.lt.s32.totalorder %s711_s16, 5  ;;  %p980_p2 = scmp.ge.s32.totalorder %s711_s16, 1 }
  0x36   : > { %p165_p5 = pnand %p980_p2, %p979_p1 }
  0x37   : > { %s859_s27 = sand.u32 (!%p165_p5), 1, %s687_s10  }
  0x38   : > { %168 = sbr.rel (%p165_p5) target bundleno = 439 (0x1b7), region = 24  ;;  %s862_s23 = sshll.u32 (!%p165_p5), %s859_s27, 3 }
  0x39   : > { %s171_s3 = scalar_lea.sflag (!%p165_p5), [#allocation3], %s859_s27  ;;  %s174_s21 = scalar_lea.vmem (!%p165_p5), [#allocation2], %s862_s23 }
  0x3f   : > { %670 = dma.done.wait (%p793_p8), %s171_s3, 128  }
  0x40   : > { %672 = vsyncadd (%p793_p8), %s171_s3, 4294967168  ;;  %v239_v0 = vlaneseq  ;;  %vm228_vm2 = vcmask 261120   ;;  %v200_v2 = vld [vmem:[%s174_s21] sm:$0xff]  ;;  %vm254_vm4 = vcmask 7168   ;;  %v714_v25 = vmov 0.0   ;;  %s451_s24 = sshll.u32 %s699_s13, 1 }
  0x41   : > { %v211_v4 = vand.u32 2147483647, %v200_v2  ;;  %vm216_vm3 = vcmp.ge.f32.partialorder %v200_v2, 0.0  ;;  %v220_v14 = vmax.f32 %v200_v2, 0.0  ;;  %s875_s7 = sadd.s32 %s695_s12, %s451_s24  ;;  %s192_s26 = scalar_lea.vmem [#allocation5], %s862_s23 }
  0x42   : > { %v240_v1 = vand.u32 127, %v239_v0  ;;  %s452_s22 = sshll.u32 %s875_s7, 7  ;;  %s300_s4 = sshll.u32 %s192_s26, 4  ;;  %s886_s4 = int_to_ptr.vmem [resolvable:$true] %s300_s4 }
  0x43   : > { %v212_v7 = vsub.f32 0.0, %v211_v4  ;;  %s884_s8 = scalar_lea.hbm %s971_s1, %s452_s22  ;;  %s280_s12 = scalar_lea.sflag [#allocation4], %s859_s27 }
  0x44   : > { %vm241_vm0 = vcmp.lt.s32.totalorder %v240_v1, 31  ;;  %vm246_vm1 = vcmp.eq.s32.totalorder %v240_v1, 31  ;;  %s581_s13 = scalar_lea.vmem %s886_s4, 128  ;;  %p981_p9 = scmp.ne.s32.totalorder %s976_s25, 0 }
  0x45   : > { %v242_v3 = vsel %vm241_vm0, %v200_v2, -inf  ;;  %v247_v5 = vsel %vm246_vm1, %v200_v2, 0.0  ;;  %v213_v9 = vmul.f32 1.442695, %v212_v7  ;;  %p582_p8 = scmp.ne.s32.totalorder %s886_s4, %s581_s13  ;;  %s715_s17 = smov [#allocation5]  }
  0x46   : > { %v243_v6 = vsel %vm228_vm2, %v242_v3, -inf  ;;  %v248_v8 = vsel %vm228_vm2, %v247_v5, 0.0  ;;  %s585_s18 = sshll.u32 %s715_s17, 4  ;;  %s586_s18 = int_to_ptr.vmem [resolvable:$false] %s585_s18 }
  0x47   : > { %244 = vmax.xlane.f32.xlu0 %v243_v6  ;;  %545 = vpow2.f32 %v213_v9  ;;  %p583_p12 = pnand %p582_p8, %p981_p9  ;;  %s587_s3 = scalar_lea.vmem %s586_s18, 256 }
  0x48   : > { %p588_p7 = scmp.lt.s32.totalorder %s886_s4, %s586_s18  ;;  %p589_p13 = scmp.lt.s32.totalorder %s587_s3, %s581_s13 }
  0x49   : > { %p584_p0 = pneg %p583_p12 }
  0x4a   : > { %p590_p4 = por %p589_p13, %p588_p7 }
  0x4b   : > { %249 = vadd.xlane.f32.xlu0 %v248_v8 }
  0x4c   : > { %p591_p6 = pnand %p590_p4, %p584_p0 }
  0x51   : > { %v546_v10 = vpop.eup %545 }
  0x52   : > { %v215_v11 = vadd.f32 1.0, %v546_v10  ;;  %v217_v12 = vsel %vm216_vm3, 1.0, %v546_v10 }
  0x54   : > { %547 = vrcp.f32 %v215_v11 }
  0x55   : > { %549 = vlog2.f32 %v215_v11 }
  0x5e   : > { %v548_v13 = vpop.eup %547 }
  0x5f   : > { %v550_v15 = vpop.eup %549  ;;  %v219_v16 = vmul.f32 %v548_v13, %v217_v12 }
  0x60   : > { %v222_v17 = vmul.f32 0.6931472, %v550_v15 }
  0x61   : > { %v224_v19 = vmul.f32 %v219_v16, %v219_v16 }
  0x62   : > { %v223_v18 = vadd.f32 %v222_v17, %v220_v14 }
  0x64   : > { %v225_v20 = vmul.f32 0.75, %v223_v18 }
  0x66   : > { %v226_v21 = vmul.f32 %v225_v20, %v224_v19 }
  0x68   : > { %v229_v22 = vsel %vm228_vm2, %v226_v21, 0.0 }
  0x69   : > { %230 = vadd.xlane.f32.xlu1 %v229_v22 }
  0xd4   : > { %v245_v23 = vpop.xlane.xlu0 %244 }
  0xd8   : > { %v250_v24 = vpop.xlane.xlu0 %249 }
  0xd9   : > { %vm251_vm5 = vcmp.ge.f32.partialorder %v245_v23, %v250_v24 }
  0xda   : > { %v252_v26 = vsel %vm251_vm5, 1.0, %v714_v25 }
  0xdb   : > { %v255_v27 = vsel %vm254_vm4, %v252_v26, 0.0 }
  0xdc   : > { %256 = vadd.xlane.f32.xlu1 %v255_v27 }
  0xf6   : > { %v231_v28 = vpop.xlane.xlu1 %230 }
  0xf7   : > { %v232_v29 = vrot.slane %v231_v28, 4 }
  0xf9   : > { %v233_v30 = vadd.f32 %v232_v29, %v231_v28 }
  0xfb   : > { %v234_v31 = vrot.slane %v233_v30, 2 }
  0xfd   : > { %v235_v32 = vadd.f32 %v234_v31, %v233_v30 }
  0xff   : > { %v236_v33 = vrot.slane %v235_v32, 1 }
 0x101   : > { %v237_v34 = vadd.f32 %v236_v33, %v235_v32 }
 0x103   : > { %457 = vpush %v237_v34 }
 0x134   : > { %s458_s5 = spop %457 }
 0x135   : > { %v272_v35 = vstv %s458_s5 }
 0x136   : > { %274 = vst [vmem:[%s192_s26] sm:$0xff] %v272_v35 }
 0x137   : > { %594 = shalt.err (!%p591_p6)
}
 0x138   : > { %s595_s21 = scalar_lea.hbm %s884_s8, 128  ;;  %s599_s5 = scalar_lea.hbm %s971_s1, 512 }
 0x139   : > { %p596_p3 = scmp.ne.s32.totalorder %s884_s8, %s595_s21  ;;  %p600_p1 = scmp.lt.u32.totalorder %s884_s8, %s971_s1 }
 0x13a   : > { %p601_p2 = scmp.lt.u32.totalorder %s599_s5, %s595_s21  ;;  %p603_p8 = scmp.lt.u32.totalorder %s595_s21, %s884_s8 }
 0x13b   : > { %p597_p10 = pnand %p596_p3, %p981_p9 }
 0x13c   : > { %p602_p5 = por %p601_p2, %p600_p1 }
 0x13d   : > { %p598_p11 = pneg %p597_p10 }
 0x13e   : > { %p604_p12 = por %p603_p8, %p602_p5 }
 0x140   : > { %p605_p0 = pnand %p604_p12, %p598_p11 }
 0x142   : > { %608 = shalt.err (!%p605_p0)
}
 0x143   : > { %463 = dma.vmem_to_hbm [thread:$0]  (%p981_p9), %s886_s4, 128, %s884_s8, %s280_s12  }
 0x144   : > { %s199_s13 = scalar_lea.vmem [#allocation6], %s862_s23  ;;  %s916_s24 = scalar_lea.hbm %s972_s2, %s452_s22 }
 0x145   : > { %s315_s17 = sshll.u32 %s199_s13, 4  ;;  %s285_s4 = scalar_lea.sflag [#allocation7], %s859_s27  ;;  %s918_s17 = int_to_ptr.vmem [resolvable:$true] %s315_s17 }
 0x146   : > { %s609_s8 = scalar_lea.vmem %s918_s17, 128  ;;  %s716_s23 = smov [#allocation6]  }
 0x147   : > { %p610_p7 = scmp.ne.s32.totalorder %s918_s17, %s609_s8  ;;  %s613_s12 = sshll.u32 %s716_s23, 4  ;;  %s614_s12 = int_to_ptr.vmem [resolvable:$false] %s613_s12 }
 0x148   : > { %s615_s7 = scalar_lea.vmem %s614_s12, 256  ;;  %p616_p6 = scmp.lt.s32.totalorder %s918_s17, %s614_s12 }
 0x149   : > { %p611_p13 = pnand %p610_p7, %p981_p9  ;;  %p617_p3 = scmp.lt.s32.totalorder %s615_s7, %s609_s8 }
 0x14b   : > { %p612_p4 = pneg %p611_p13  ;;  %p618_p10 = por %p617_p3, %p616_p6 }
 0x14d   : > { %p619_p11 = pnand %p618_p10, %p612_p4 }
 0x169   : > { %v257_v36 = vpop.xlane.xlu1 %256 }
 0x16a   : > { %v258_v37 = vrot.slane %v257_v36, 4 }
 0x16c   : > { %v259_v38 = vadd.f32 %v258_v37, %v257_v36 }
 0x16e   : > { %v260_v39 = vrot.slane %v259_v38, 2 }
 0x170   : > { %v261_v40 = vadd.f32 %v260_v39, %v259_v38 }
 0x172   : > { %v262_v41 = vrot.slane %v261_v40, 1 }
 0x174   : > { %v263_v42 = vadd.f32 %v262_v41, %v261_v40 }
 0x176   : > { %459 = vpush %v263_v42 }
 0x1a7   : > { %s460_s18 = spop %459 }
 0x1a8   : > { %v276_v43 = vstv %s460_s18 }
 0x1a9   : > { %278 = vst [vmem:[%s199_s13] sm:$0xff] %v276_v43 }
 0x1aa   : > { %622 = shalt.err (!%p619_p11)
}
 0x1ab   : > { %s623_s27 = scalar_lea.hbm %s916_s24, 128  ;;  %s627_s5 = scalar_lea.hbm %s972_s2, 512 }
 0x1ac   : > { %p624_p1 = scmp.ne.s32.totalorder %s916_s24, %s623_s27  ;;  %p628_p8 = scmp.lt.u32.totalorder %s916_s24, %s972_s2 }
 0x1ad   : > { %p629_p12 = scmp.lt.u32.totalorder %s627_s5, %s623_s27  ;;  %p631_p7 = scmp.lt.u32.totalorder %s623_s27, %s916_s24 }
 0x1ae   : > { %p625_p2 = pnand %p624_p1, %p981_p9 }
 0x1af   : > { %p630_p0 = por %p629_p12, %p628_p8 }
 0x1b0   : > { %p626_p5 = pneg %p625_p2 }
 0x1b1   : > { %p632_p13 = por %p631_p7, %p630_p0 }
 0x1b3   : > { %p633_p4 = pnand %p632_p13, %p626_p5 }
 0x1b5   : > { %636 = shalt.err (!%p633_p4)
}
 0x1b6   : > { %464 = dma.vmem_to_hbm [thread:$0]  (%p981_p9), %s918_s17, 128, %s916_s24, %s285_s4  }
 0x1b7 PF: > { %p479_p6 = scmp.ge.s32.totalorder %s711_s16, 2  ;;  %s327_s13 = sand.u32 1, %s683_s9  }
 0x1b8   : > { %p982_p3 = scmp.ne.s32.totalorder %s977_s28, 0  ;;  %s328_s18 = scalar_lea.sflag [#allocation4], %s327_s13 }
 0x1ba   : > { %p472_p10 = pnand %p479_p6, %p982_p3 }
 0x1bc   : > { %674 = dma.done.wait (!%p472_p10), %s328_s18, 128  }
 0x1bd   : > { %676 = vsyncadd (!%p472_p10), %s328_s18, 4294967168  ;;  %s337_s3 = scalar_lea.sflag [#allocation7], %s327_s13 }
 0x1be   : > { %678 = dma.done.wait (!%p472_p10), %s337_s3, 128  }
 0x1bf   : > { %680 = vsyncadd (!%p472_p10), %s337_s3, 4294967168  ;;  %s22_s16 = sadd.s32 1, %s711_s16   ;;  %s983_s9 = smov %s687_s10 }
 0x1c0   : > { %p19_p11 = scmp.ge.s32.totalorder %s22_s16, 6   ;;  %s984_s10 = smov %s691_s11 }
 0x1c1   : > { %s985_s11 = smov %s810_s30  ;;  %s986_s12 = smov %s703_s14 }
 0x1c2   : > { %s987_s13 = smov %s707_s15  ;;  %s988_s14 = smov %s991_s19 }
 0x1c3   : > { %s989_s15 = smov %s995_s20  ;;  %21 = sbr.rel (!%p19_p11) target bundleno = 9 (0x9), region = 90 }
 0x1ca   :  { %342 = vsyncpa [#allocation3], 1 }
 0x1cb   :  { %344 = vsyncpa [#allocation3 + $0x1], 1 }
 0x1cc   :  { %345 = vsyncpa [#allocation4], 1 }
 0x1cd   :  { %347 = vsyncpa [#allocation4 + $0x1], 1 }
 0x1ce   :  { %348 = vsyncpa [#allocation7], 1 }
 0x1cf   :  { %350 = vsyncpa [#allocation7 + $0x1], 1 }

</bundles_post_ra>
